<compile_context>
chip_gen: v7x
topology: tpu7x:2x2x1
jax: 0.10.0
libtpu: 0.0.40
codegen_flags: <defaults>
</compile_context>

<pallas_src>
from functools import partial

import jax
import jax.numpy as jnp
import numpy as np
from jax.experimental import pallas as pl
from jax.experimental.pallas import tpu as pltpu

EPS = 1e-5


# --------------------------------------------------------------------------------------
# in-kernel helpers
# --------------------------------------------------------------------------------------
def _conv_same_im2col(h, w_ref, l_idx, *, L, P, K):
    """'same' 1-D conv (stride 1, zero pad P) over rows of h as ONE fused matmul.

    h:     (R, C) f32, R = (#sequences in tile) * L, whole sequences back to back.
    w_ref: (K*Cin, Cout) bf16 ref; row k*Cin + ci == torch_conv.weight[co, ci, k].
    l_idx: (R, 1) int32, position of each row inside its length-L sequence.
    Returns (R, Cout) f32.  No bias (it cancels in the following training-mode BN).
    """
    R = h.shape[0]
    cols = []
    for k in range(K):                        # K is small & static -> fully unrolled
        d = k - P                             # out[l] += x[l + d] @ w[k]
        if d == 0:
            cols.append(h)
        else:
            # XLU sublane rotation (wrap-around): col[r] = h[(r + d) mod R], then zero
            # rows whose source l + d falls outside [0, L) -- this also zeroes rows
            # that wrapped across a sequence boundary inside the tile.  The mask is a
            # (R, 1) broadcast multiply (cheap VALU) instead of a full-width select.
            col = pltpu.roll(h, (-d) % R, 0)
            valid = jnp.logical_and(l_idx + d >= 0, l_idx + d < L)    # (R, 1)
            cols.append(col * valid.astype(h.dtype))
    # One deep MXU contraction: (R, K*C) bf16 x (K*C, C) bf16 -> f32.
    lhs = jnp.concatenate(cols, axis=1).astype(jnp.bfloat16)
    return jnp.dot(lhs, w_ref[...], preferred_element_type=jnp.float32)


def _seq_pos(R, L):
    """(R, 1) int32 position of each row inside its length-L sequence (1-lane wide,
    computed once per tile, so the modulo cost is negligible)."""
    return jax.lax.broadcasted_iota(jnp.int32, (R, 1), 0) % L


# --------------------------------------------------------------------------------------
# kernels
# --------------------------------------------------------------------------------------
def _conv1_stats_kernel(x_ref, w1_ref, s1_ref, ss1_ref, *, L, P, K):
    """pass A (stats only): partial per-channel sum / sum-of-squares of conv1(x).
    conv1 is recomputed in pass B, so no activation slab is written back to HBM."""
    x = x_ref[...]
    l_idx = _seq_pos(x.shape[0], L)
    a = _conv_same_im2col(x, w1_ref, l_idx, L=L, P=P, K=K)
    s1_ref[...] = jnp.sum(a, axis=0, keepdims=True)[None]        # (1,1,C)
    ss1_ref[...] = jnp.sum(a * a, axis=0, keepdims=True)[None]    # (1,1,C)


def _bn1_conv2_res_kernel(x_ref, w1_ref, sc1_ref, sh1_ref, w2_ref,
                          y_ref, s2_ref, ss2_ref, *, L, P, K):
    """pass B: a1 = conv1(x) (recomputed); h = relu(a1*sc1 + sh1) (BN1 folded);
    y = conv2(h) + x; write y in bf16 and emit per-tile partial stats of y (f32)."""
    x = x_ref[...]
    l_idx = _seq_pos(x.shape[0], L)
    a1 = _conv_same_im2col(x, w1_ref, l_idx, L=L, P=P, K=K)
    h = jnp.maximum(a1 * sc1_ref[...] + sh1_ref[...], 0.0)
    y = _conv_same_im2col(h, w2_ref, l_idx, L=L, P=P, K=K) + x    # residual in f32
    y_ref[...] = y.astype(y_ref.dtype)                            # bf16 store (half HBM)
    s2_ref[...] = jnp.sum(y, axis=0, keepdims=True)[None]
    ss2_ref[...] = jnp.sum(y * y, axis=0, keepdims=True)[None]


# --------------------------------------------------------------------------------------
# wrappers
# --------------------------------------------------------------------------------------
def _fold_bn(s, ss, gamma, beta, n):
    """Finalise batch statistics from per-tile partials (size-C math, done in XLA)
    and fold BN into a per-channel affine: bn(x) == x * scale + shift."""
    mean = jnp.sum(s, axis=(0, 1)) / n
    # one-pass variance; clamp at 0 to guard against f32 cancellation at large N*L
    var = jnp.maximum(jnp.sum(ss, axis=(0, 1)) / n - mean * mean, 0.0)
    inv = jax.lax.rsqrt(var + EPS)
    scale = gamma.reshape(-1) * inv
    shift = beta.reshape(-1) - mean * scale
    return scale.reshape(1, -1), shift.reshape(1, -1)


def _choose_batch_block(N, L, target_rows=2048):
    """Batch tile NB: rows per tile R = NB*L near `target_rows` (amortise per-step
    overhead / hit HBM roofline), R a multiple of 8 when the grid has >1 step, and
    T = N // NB >= 2 when possible so both v7x TensorCores stay busy."""
    best = None
    for d in range(1, N + 1):
        if N % d:
            continue
        R, T = d * L, N // d
        if T > 1 and R % 8 != 0:          # (8,128) BlockSpec constraint on tiled rows
            continue
        key = (R <= target_rows, T >= 2, R if R <= target_rows else -R)
        if best is None or key > best[0]:
            best = (key, d)
    return N if best is None else best[1]


def msblock_forward_nlc(x_nlc, params, padding, *, batch_block=None, target_rows=2048):
    """MSBlock forward, channels-last input (N, L, C).  Returns (N, L, C) f32."""
    w1, b1, g1, be1, w2, b2, g2, be2 = params
    del b1, b2   # conv biases cancel exactly in the training-mode BatchNorm that follows

    N, L, Cin = x_nlc.shape
    K, _, Cout = w1.shape
    assert Cin == Cout, "use_1x1_conv=False path requires in_channel == out_channel"
    assert K == 2 * padding + 1, "residual add requires 'same' conv (scale == 2*padding+1)"
    C = Cout
    NB = _choose_batch_block(N, L, target_rows) if batch_block is None else batch_block
    assert N % NB == 0
    T = N // NB                 # grid size (batch tiles); conv halo never crosses a batch
    R = NB * L                  # rows per tile
    assert T == 1 or R % 8 == 0, "tiled row blocks must be a multiple of 8"
    n_elems = N * L             # elements per channel for the BN statistics

    x2 = x_nlc.reshape(N * L, C).astype(jnp.float32)
    # conv weights flattened for the fused im2col matmul, cast to bf16 once (MXU operands)
    w1f = w1.reshape(K * C, C).astype(jnp.bfloat16)
    w2f = w2.reshape(K * C, C).astype(jnp.bfloat16)

    row_spec = pl.BlockSpec((R, C), lambda i: (i, 0))
    stat_spec = pl.BlockSpec((1, 1, C), lambda i: (i, 0, 0))
    w_spec = pl.BlockSpec((K * C, C), lambda i: (0, 0))
    vec_spec = pl.BlockSpec((1, C), lambda i: (0, 0))
    cparams = pltpu.CompilerParams(
        dimension_semantics=("parallel",),
        vmem_limit_bytes=48 * 1024 * 1024,   # safe on v7x (64 MiB phys), ample on v5e/v6e
    )

    # ---- pass A: partial BN1 statistics of conv1(x) (stats-only, no slab writeback) ----
    s1, ss1 = pl.pallas_call(
        partial(_conv1_stats_kernel, L=L, P=padding, K=K),
        grid=(T,),
        in_specs=[row_spec, w_spec],
        out_specs=(stat_spec, stat_spec),
        out_shape=(jax.ShapeDtypeStruct((T, 1, C), jnp.float32),
                   jax.ShapeDtypeStruct((T, 1, C), jnp.float32)),
        compiler_params=cparams,
    )(x2, w1f)
    sc1, sh1 = _fold_bn(s1, ss1, g1, be1, n_elems)

    # ---- pass B: conv1 (recomputed) -> BN1+ReLU (folded) -> conv2 -> + residual --------
    y, s2, ss2 = pl.pallas_call(
        partial(_bn1_conv2_res_kernel, L=L, P=padding, K=K),
        grid=(T,),
        in_specs=[row_spec, w_spec, vec_spec, vec_spec, w_spec],
        out_specs=(row_spec, stat_spec, stat_spec),
        out_shape=(jax.ShapeDtypeStruct((N * L, C), jnp.bfloat16),   # bf16 intermediate
                   jax.ShapeDtypeStruct((T, 1, C), jnp.float32),
                   jax.ShapeDtypeStruct((T, 1, C), jnp.float32)),
        compiler_params=cparams,
    )(x2, w1f, sc1, sh1, w2f)
    sc2, sh2 = _fold_bn(s2, ss2, g2, be2, n_elems)

    # ---- pass C: final BN (folded) + ReLU.  Trivial memory-bound elementwise: kept as
    # plain XLA so it fuses with the next block's consumer instead of being a
    # pallas_call fusion barrier.
    out2 = jnp.maximum(y.astype(jnp.float32) * sc2 + sh2, 0.0)
    return out2.reshape(N, L, C)


def msblock_forward(x_ncl, params, padding, *, batch_block=None):
    """PyTorch-layout convenience wrapper: x (N, C, L) -> out (N, C, L).
    The two transposes cost an HBM round trip each; a real model should stay
    channels-last and call msblock_forward_nlc directly."""
    x_nlc = jnp.transpose(x_ncl, (0, 2, 1))
    out_nlc = msblock_forward_nlc(x_nlc, params, padding, batch_block=batch_block)
    return jnp.transpose(out_nlc, (0, 2, 1))


# --------------------------------------------------------------------------------------
# pure-JAX reference (faithful to the PyTorch module, incl. conv biases, two-pass var)
# --------------------------------------------------------------------------------------
def _reference_forward(x_ncl, params, padding):
    w1, b1, g1, be1, w2, b2, g2, be2 = params
    P = padding
    K = w1.shape[0]
    x = jnp.transpose(x_ncl, (0, 2, 1)).astype(jnp.float32)
    N, L, _ = x.shape

    def conv(h, w, b):
        hp = jnp.pad(h, ((0, 0), (P, P), (0, 0)))
        acc = sum(jnp.einsum('nlc,cd->nld', hp[:, k:k + L, :], w[k]) for k in range(K))
        return acc + b.reshape(1, 1, -1)

    def bn_relu(h, g, be):
        m = jnp.mean(h, axis=(0, 1), keepdims=True)
        v = jnp.mean((h - m) ** 2, axis=(0, 1), keepdims=True)
        return jnp.maximum((h - m) * jax.lax.rsqrt(v + EPS) * g.reshape(1, 1, -1)
                           + be.reshape(1, 1, -1), 0.0)

    h = bn_relu(conv(x, w1, b1), g1, be1)
    y = conv(h, w2, b2) + x
    out = bn_relu(y, g2, be2)
    return jnp.transpose(out, (0, 2, 1))


def init_params(key, in_channel, out_channel, scale):
    """Deterministic synthetic init.  Conv weights stored as (K, Cin, Cout)
    (w[k, ci, co] == torch_w[co, ci, k]); BN gamma=1, beta=0 like PyTorch's init."""
    k1, k2, k3, k4 = jax.random.split(key, 4)
    w1 = 0.1 * jax.random.normal(k1, (scale, in_channel, out_channel), jnp.float32)
    b1 = 0.05 * jax.random.normal(k2, (1, 1, out_channel), jnp.float32)
    w2 = 0.1 * jax.random.normal(k3, (scale, out_channel, out_channel), jnp.float32)
    b2 = 0.05 * jax.random.normal(k4, (1, 1, out_channel), jnp.float32)
    g1 = jnp.ones((1, 1, out_channel), jnp.float32)
    be1 = jnp.zeros((1, 1, out_channel), jnp.float32)
    g2 = jnp.ones((1, 1, out_channel), jnp.float32)
    be2 = jnp.zeros((1, 1, out_channel), jnp.float32)
    return (w1, b1, g1, be1, w2, b2, g2, be2)


if __name__ == "__main__":
    # MSBlock(in_channel=32, out_channel=32, scale=3, stride=1, padding=1,
    #         use_1x1_conv=False) in training mode (BatchNorm uses batch statistics).
    N, C, L = 2, 32, 16
    scale, padding = 3, 1

    key = jax.random.PRNGKey(0)
    kx, kp = jax.random.split(key)
    x = jax.random.normal(kx, (N, C, L), jnp.float32)     # PyTorch NCL input
    params = init_params(kp, C, C, scale)

    fwd = jax.jit(lambda xx, pp: msblock_forward(xx, pp, padding))
    out = jax.block_until_ready(fwd(x, params))

    ref = _reference_forward(x, params, padding)
    assert out.shape == (N, C, L)
    # bf16 MXU operands / bf16 y intermediate -> tolerance loosened vs the f32 reference
    np.testing.assert_allclose(np.asarray(out), np.asarray(ref), rtol=3e-2, atol=3e-2)

    print("KERNEL_OK")
</pallas_src>

<mosaic_0001>
module attributes {stable_mosaic.version = 11 : i64} {
  func.func @_conv1_stats_kernel(%arg0: i32, %arg1: memref<16x32xf32, #tpu.memory_space<vmem>>, %arg2: memref<96x32xbf16, #tpu.memory_space<vmem>>, %arg3: memref<1x1x32xf32, #tpu.memory_space<vmem>>, %arg4: memref<1x1x32xf32, #tpu.memory_space<vmem>>) attributes {dimension_semantics = [#tpu.dimension_semantics<parallel>], iteration_bounds = array<i64: 2>, scalar_prefetch = 0 : i64, scratch_operands = 0 : i64, tpu.core_type = #tpu.core_type<tc>, window_params = [{transform_indices = @transform_0, window_bounds = array<i64: 16, 32>}, {pipeline_mode = #tpu.pipeline_mode<synchronous>, transform_indices = @transform_1, window_bounds = array<i64: 96, 32>}, {transform_indices = @transform_2, window_bounds = array<i64: 1, 1, 32>}, {transform_indices = @transform_3, window_bounds = array<i64: 1, 1, 32>}]} {
    %c0 = arith.constant 0 : index
    %c0_0 = arith.constant 0 : index
    %0 = vector.load %arg1[%c0, %c0_0] : memref<16x32xf32, #tpu.memory_space<vmem>>, vector<16x32xf32>
    %1 = tpu.iota {dimensions = array<i32: 0>} : vector<16x1xi32>
    %c16_i32 = arith.constant 16 : i32
    %c0_i32 = arith.constant 0 : i32
    %2 = arith.cmpi eq, %c16_i32, %c0_i32 : i32
    %c1_i32 = arith.constant 1 : i32
    %3 = arith.select %2, %c1_i32, %c16_i32 : i32
    %4 = vector.broadcast %3 : i32 to vector<16x1xi32>
    %5 = arith.remsi %1, %4 : vector<16x1xi32>
    %c0_i32_1 = arith.constant 0 : i32
    %6 = vector.broadcast %c0_i32_1 : i32 to vector<16x1xi32>
    %7 = arith.cmpi ne, %5, %6 : vector<16x1xi32>
    %c0_i32_2 = arith.constant 0 : i32
    %8 = vector.broadcast %c0_i32_2 : i32 to vector<16x1xi32>
    %9 = arith.cmpi slt, %5, %8 : vector<16x1xi32>
    %c0_i32_3 = arith.constant 0 : i32
    %10 = arith.cmpi slt, %3, %c0_i32_3 : i32
    %11 = vector.broadcast %10 : i1 to vector<16x1xi1>
    %12 = vector.broadcast %11 : vector<16x1xi1> to vector<16x1xi1>
    %13 = arith.xori %9, %12 : vector<16x1xi1>
    %14 = arith.andi %13, %7 : vector<16x1xi1>
    %15 = vector.broadcast %3 : i32 to vector<16x1xi32>
    %16 = arith.addi %5, %15 : vector<16x1xi32>
    %17 = arith.select %14, %16, %5 : vector<16x1xi1>, vector<16x1xi32>
    %c1_i32_4 = arith.constant 1 : i32
    %18 = tpu.dynamic_rotate %0 by %c1_i32_4 dim 0 : vector<16x32xf32>, i32 -> vector<16x32xf32>
    %c-1_i32 = arith.constant -1 : i32
    %19 = vector.broadcast %c-1_i32 : i32 to vector<16x1xi32>
    %20 = arith.addi %17, %19 : vector<16x1xi32>
    %c0_i32_5 = arith.constant 0 : i32
    %21 = vector.broadcast %c0_i32_5 : i32 to vector<16x1xi32>
    %22 = arith.cmpi sge, %20, %21 : vector<16x1xi32>
    %c-1_i32_6 = arith.constant -1 : i32
    %23 = vector.broadcast %c-1_i32_6 : i32 to vector<16x1xi32>
    %24 = arith.addi %17, %23 : vector<16x1xi32>
    %c16_i32_7 = arith.constant 16 : i32
    %25 = vector.broadcast %c16_i32_7 : i32 to vector<16x1xi32>
    %26 = arith.cmpi slt, %24, %25 : vector<16x1xi32>
    %27 = arith.andi %22, %26 : vector<16x1xi1>
    %28 = arith.extui %27 : vector<16x1xi1> to vector<16x1xi32>
    %29 = arith.sitofp %28 : vector<16x1xi32> to vector<16x1xf32>
    %30 = vector.broadcast %29 : vector<16x1xf32> to vector<16x32xf32>
    %31 = arith.mulf %18, %30 : vector<16x32xf32>
    %c15_i32 = arith.constant 15 : i32
    %32 = tpu.dynamic_rotate %0 by %c15_i32 dim 0 : vector<16x32xf32>, i32 -> vector<16x32xf32>
    %c1_i32_8 = arith.constant 1 : i32
    %33 = vector.broadcast %c1_i32_8 : i32 to vector<16x1xi32>
    %34 = arith.addi %17, %33 : vector<16x1xi32>
    %c0_i32_9 = arith.constant 0 : i32
    %35 = vector.broadcast %c0_i32_9 : i32 to vector<16x1xi32>
    %36 = arith.cmpi sge, %34, %35 : vector<16x1xi32>
    %c1_i32_10 = arith.constant 1 : i32
    %37 = vector.broadcast %c1_i32_10 : i32 to vector<16x1xi32>
    %38 = arith.addi %17, %37 : vector<16x1xi32>
    %c16_i32_11 = arith.constant 16 : i32
    %39 = vector.broadcast %c16_i32_11 : i32 to vector<16x1xi32>
    %40 = arith.cmpi slt, %38, %39 : vector<16x1xi32>
    %41 = arith.andi %36, %40 : vector<16x1xi1>
    %42 = arith.extui %41 : vector<16x1xi1> to vector<16x1xi32>
    %43 = arith.sitofp %42 : vector<16x1xi32> to vector<16x1xf32>
    %44 = vector.broadcast %43 : vector<16x1xf32> to vector<16x32xf32>
    %45 = arith.mulf %32, %44 : vector<16x32xf32>
    %46 = tpu.concatenate %31, %0, %45 in 1 : vector<16x32xf32>, vector<16x32xf32>, vector<16x32xf32> -> vector<16x96xf32>
    %47 = arith.truncf %46 : vector<16x96xf32> to vector<16x96xbf16>
    %c0_12 = arith.constant 0 : index
    %c0_13 = arith.constant 0 : index
    %48 = vector.load %arg2[%c0_12, %c0_13] : memref<96x32xbf16, #tpu.memory_space<vmem>>, vector<96x32xbf16>
    %cst = arith.constant dense<0.000000e+00> : vector<16x32xf32>
    %49 = tpu.matmul %47, %48, %cst {dimension_numbers = #tpu.dot_dimension_numbers<[1], [0], [0], [1], [0, 0, 1, 1], [], []>} : vector<16x96xbf16>, vector<96x32xbf16>, vector<16x32xf32> -> vector<16x32xf32>
    %cst_14 = arith.constant dense<0.000000e+00> : vector<32xf32>
    %50 = vector.multi_reduction <add>, %49, %cst_14 [0] : vector<16x32xf32> to vector<32xf32>
    %51 = vector.shape_cast %50 : vector<32xf32> to vector<1x32xf32>
    %52 = vector.shape_cast %51 : vector<1x32xf32> to vector<1x1x32xf32>
    %c0_15 = arith.constant 0 : index
    %c0_16 = arith.constant 0 : index
    %c0_17 = arith.constant 0 : index
    %53 = vector.load %arg3[%c0_15, %c0_16, %c0_17] : memref<1x1x32xf32, #tpu.memory_space<vmem>>, vector<1x1x32xf32>
    tpu.vector_store %arg3[%c0_15, %c0_16, %c0_17], %52 {strides = array<i32>} : memref<1x1x32xf32, #tpu.memory_space<vmem>>, vector<1x1x32xf32>,
    %54 = arith.mulf %49, %49 : vector<16x32xf32>
    %cst_18 = arith.constant dense<0.000000e+00> : vector<32xf32>
    %55 = vector.multi_reduction <add>, %54, %cst_18 [0] : vector<16x32xf32> to vector<32xf32>
    %56 = vector.shape_cast %55 : vector<32xf32> to vector<1x32xf32>
    %57 = vector.shape_cast %56 : vector<1x32xf32> to vector<1x1x32xf32>
    %c0_19 = arith.constant 0 : index
    %c0_20 = arith.constant 0 : index
    %c0_21 = arith.constant 0 : index
    %58 = vector.load %arg4[%c0_19, %c0_20, %c0_21] : memref<1x1x32xf32, #tpu.memory_space<vmem>>, vector<1x1x32xf32>
    tpu.vector_store %arg4[%c0_19, %c0_20, %c0_21], %57 {strides = array<i32>} : memref<1x1x32xf32, #tpu.memory_space<vmem>>, vector<1x1x32xf32>,
    return
  }
  func.func @transform_0(%arg0: i32) -> (i32, i32) {
    %c0_i32 = arith.constant 0 : i32
    %c0_i32_0 = arith.constant 0 : i32
    return %arg0, %c0_i32 : i32, i32
  }
  func.func @transform_1(%arg0: i32) -> (i32, i32) {
    %c0_i32 = arith.constant 0 : i32
    %c0_i32_0 = arith.constant 0 : i32
    %c0_i32_1 = arith.constant 0 : i32
    return %c0_i32, %c0_i32_0 : i32, i32
  }
  func.func @transform_2(%arg0: i32) -> (i32, i32, i32) {
    %c0_i32 = arith.constant 0 : i32
    %c0_i32_0 = arith.constant 0 : i32
    %c0_i32_1 = arith.constant 0 : i32
    return %arg0, %c0_i32, %c0_i32_0 : i32, i32, i32
  }
  func.func @transform_3(%arg0: i32) -> (i32, i32, i32) {
    %c0_i32 = arith.constant 0 : i32
    %c0_i32_0 = arith.constant 0 : i32
    %c0_i32_1 = arith.constant 0 : i32
    return %arg0, %c0_i32, %c0_i32_0 : i32, i32, i32
  }
}

module attributes {stable_mosaic.version = 11 : i64} {
  func.func @_bn1_conv2_res_kernel(%arg0: i32, %arg1: memref<16x32xf32, #tpu.memory_space<vmem>>, %arg2: memref<96x32xbf16, #tpu.memory_space<vmem>>, %arg3: memref<1x32xf32, #tpu.memory_space<vmem>>, %arg4: memref<1x32xf32, #tpu.memory_space<vmem>>, %arg5: memref<96x32xbf16, #tpu.memory_space<vmem>>, %arg6: memref<16x32xbf16, #tpu.memory_space<vmem>>, %arg7: memref<1x1x32xf32, #tpu.memory_space<vmem>>, %arg8: memref<1x1x32xf32, #tpu.memory_space<vmem>>) attributes {dimension_semantics = [#tpu.dimension_semantics<parallel>], iteration_bounds = array<i64: 2>, scalar_prefetch = 0 : i64, scratch_operands = 0 : i64, tpu.core_type = #tpu.core_type<tc>, window_params = [{transform_indices = @transform_0, window_bounds = array<i64: 16, 32>}, {pipeline_mode = #tpu.pipeline_mode<synchronous>, transform_indices = @transform_1, window_bounds = array<i64: 96, 32>}, {pipeline_mode = #tpu.pipeline_mode<synchronous>, transform_indices = @transform_2, window_bounds = array<i64: 1, 32>}, {pipeline_mode = #tpu.pipeline_mode<synchronous>, transform_indices = @transform_3, window_bounds = array<i64: 1, 32>}, {pipeline_mode = #tpu.pipeline_mode<synchronous>, transform_indices = @transform_4, window_bounds = array<i64: 96, 32>}, {transform_indices = @transform_5, window_bounds = array<i64: 16, 32>}, {transform_indices = @transform_6, window_bounds = array<i64: 1, 1, 32>}, {transform_indices = @transform_7, window_bounds = array<i64: 1, 1, 32>}]} {
    %c0 = arith.constant 0 : index
    %c0_0 = arith.constant 0 : index
    %0 = vector.load %arg1[%c0, %c0_0] : memref<16x32xf32, #tpu.memory_space<vmem>>, vector<16x32xf32>
    %1 = tpu.iota {dimensions = array<i32: 0>} : vector<16x1xi32>
    %c16_i32 = arith.constant 16 : i32
    %c0_i32 = arith.constant 0 : i32
    %2 = arith.cmpi eq, %c16_i32, %c0_i32 : i32
    %c1_i32 = arith.constant 1 : i32
    %3 = arith.select %2, %c1_i32, %c16_i32 : i32
    %4 = vector.broadcast %3 : i32 to vector<16x1xi32>
    %5 = arith.remsi %1, %4 : vector<16x1xi32>
    %c0_i32_1 = arith.constant 0 : i32
    %6 = vector.broadcast %c0_i32_1 : i32 to vector<16x1xi32>
    %7 = arith.cmpi ne, %5, %6 : vector<16x1xi32>
    %c0_i32_2 = arith.constant 0 : i32
    %8 = vector.broadcast %c0_i32_2 : i32 to vector<16x1xi32>
    %9 = arith.cmpi slt, %5, %8 : vector<16x1xi32>
    %c0_i32_3 = arith.constant 0 : i32
    %10 = arith.cmpi slt, %3, %c0_i32_3 : i32
    %11 = vector.broadcast %10 : i1 to vector<16x1xi1>
    %12 = vector.broadcast %11 : vector<16x1xi1> to vector<16x1xi1>
    %13 = arith.xori %9, %12 : vector<16x1xi1>
    %14 = arith.andi %13, %7 : vector<16x1xi1>
    %15 = vector.broadcast %3 : i32 to vector<16x1xi32>
    %16 = arith.addi %5, %15 : vector<16x1xi32>
    %17 = arith.select %14, %16, %5 : vector<16x1xi1>, vector<16x1xi32>
    %c1_i32_4 = arith.constant 1 : i32
    %18 = tpu.dynamic_rotate %0 by %c1_i32_4 dim 0 : vector<16x32xf32>, i32 -> vector<16x32xf32>
    %c-1_i32 = arith.constant -1 : i32
    %19 = vector.broadcast %c-1_i32 : i32 to vector<16x1xi32>
    %20 = arith.addi %17, %19 : vector<16x1xi32>
    %c0_i32_5 = arith.constant 0 : i32
    %21 = vector.broadcast %c0_i32_5 : i32 to vector<16x1xi32>
    %22 = arith.cmpi sge, %20, %21 : vector<16x1xi32>
    %c-1_i32_6 = arith.constant -1 : i32
    %23 = vector.broadcast %c-1_i32_6 : i32 to vector<16x1xi32>
    %24 = arith.addi %17, %23 : vector<16x1xi32>
    %c16_i32_7 = arith.constant 16 : i32
    %25 = vector.broadcast %c16_i32_7 : i32 to vector<16x1xi32>
    %26 = arith.cmpi slt, %24, %25 : vector<16x1xi32>
    %27 = arith.andi %22, %26 : vector<16x1xi1>
    %28 = arith.extui %27 : vector<16x1xi1> to vector<16x1xi32>
    %29 = arith.sitofp %28 : vector<16x1xi32> to vector<16x1xf32>
    %30 = vector.broadcast %29 : vector<16x1xf32> to vector<16x32xf32>
    %31 = arith.mulf %18, %30 : vector<16x32xf32>
    %c15_i32 = arith.constant 15 : i32
    %32 = tpu.dynamic_rotate %0 by %c15_i32 dim 0 : vector<16x32xf32>, i32 -> vector<16x32xf32>
    %c1_i32_8 = arith.constant 1 : i32
    %33 = vector.broadcast %c1_i32_8 : i32 to vector<16x1xi32>
    %34 = arith.addi %17, %33 : vector<16x1xi32>
    %c0_i32_9 = arith.constant 0 : i32
    %35 = vector.broadcast %c0_i32_9 : i32 to vector<16x1xi32>
    %36 = arith.cmpi sge, %34, %35 : vector<16x1xi32>
    %c1_i32_10 = arith.constant 1 : i32
    %37 = vector.broadcast %c1_i32_10 : i32 to vector<16x1xi32>
    %38 = arith.addi %17, %37 : vector<16x1xi32>
    %c16_i32_11 = arith.constant 16 : i32
    %39 = vector.broadcast %c16_i32_11 : i32 to vector<16x1xi32>
    %40 = arith.cmpi slt, %38, %39 : vector<16x1xi32>
    %41 = arith.andi %36, %40 : vector<16x1xi1>
    %42 = arith.extui %41 : vector<16x1xi1> to vector<16x1xi32>
    %43 = arith.sitofp %42 : vector<16x1xi32> to vector<16x1xf32>
    %44 = vector.broadcast %43 : vector<16x1xf32> to vector<16x32xf32>
    %45 = arith.mulf %32, %44 : vector<16x32xf32>
    %46 = tpu.concatenate %31, %0, %45 in 1 : vector<16x32xf32>, vector<16x32xf32>, vector<16x32xf32> -> vector<16x96xf32>
    %47 = arith.truncf %46 : vector<16x96xf32> to vector<16x96xbf16>
    %c0_12 = arith.constant 0 : index
    %c0_13 = arith.constant 0 : index
    %48 = vector.load %arg2[%c0_12, %c0_13] : memref<96x32xbf16, #tpu.memory_space<vmem>>, vector<96x32xbf16>
    %cst = arith.constant dense<0.000000e+00> : vector<16x32xf32>
    %49 = tpu.matmul %47, %48, %cst {dimension_numbers = #tpu.dot_dimension_numbers<[1], [0], [0], [1], [0, 0, 1, 1], [], []>} : vector<16x96xbf16>, vector<96x32xbf16>, vector<16x32xf32> -> vector<16x32xf32>
    %c0_14 = arith.constant 0 : index
    %c0_15 = arith.constant 0 : index
    %50 = vector.load %arg3[%c0_14, %c0_15] : memref<1x32xf32, #tpu.memory_space<vmem>>, vector<1x32xf32>
    %51 = vector.broadcast %50 : vector<1x32xf32> to vector<16x32xf32>
    %52 = arith.mulf %49, %51 : vector<16x32xf32>
    %c0_16 = arith.constant 0 : index
    %c0_17 = arith.constant 0 : index
    %53 = vector.load %arg4[%c0_16, %c0_17] : memref<1x32xf32, #tpu.memory_space<vmem>>, vector<1x32xf32>
    %54 = vector.broadcast %53 : vector<1x32xf32> to vector<16x32xf32>
    %55 = arith.addf %52, %54 : vector<16x32xf32>
    %cst_18 = arith.constant 0.000000e+00 : f32
    %56 = vector.broadcast %cst_18 : f32 to vector<16x32xf32>
    %57 = arith.maximumf %55, %56 : vector<16x32xf32>
    %c1_i32_19 = arith.constant 1 : i32
    %58 = tpu.dynamic_rotate %57 by %c1_i32_19 dim 0 : vector<16x32xf32>, i32 -> vector<16x32xf32>
    %c-1_i32_20 = arith.constant -1 : i32
    %59 = vector.broadcast %c-1_i32_20 : i32 to vector<16x1xi32>
    %60 = arith.addi %17, %59 : vector<16x1xi32>
    %c0_i32_21 = arith.constant 0 : i32
    %61 = vector.broadcast %c0_i32_21 : i32 to vector<16x1xi32>
    %62 = arith.cmpi sge, %60, %61 : vector<16x1xi32>
    %c-1_i32_22 = arith.constant -1 : i32
    %63 = vector.broadcast %c-1_i32_22 : i32 to vector<16x1xi32>
    %64 = arith.addi %17, %63 : vector<16x1xi32>
    %c16_i32_23 = arith.constant 16 : i32
    %65 = vector.broadcast %c16_i32_23 : i32 to vector<16x1xi32>
    %66 = arith.cmpi slt, %64, %65 : vector<16x1xi32>
    %67 = arith.andi %62, %66 : vector<16x1xi1>
    %68 = arith.extui %67 : vector<16x1xi1> to vector<16x1xi32>
    %69 = arith.sitofp %68 : vector<16x1xi32> to vector<16x1xf32>
    %70 = vector.broadcast %69 : vector<16x1xf32> to vector<16x32xf32>
    %71 = arith.mulf %58, %70 : vector<16x32xf32>
    %c15_i32_24 = arith.constant 15 : i32
    %72 = tpu.dynamic_rotate %57 by %c15_i32_24 dim 0 : vector<16x32xf32>, i32 -> vector<16x32xf32>
    %c1_i32_25 = arith.constant 1 : i32
    %73 = vector.broadcast %c1_i32_25 : i32 to vector<16x1xi32>
    %74 = arith.addi %17, %73 : vector<16x1xi32>
    %c0_i32_26 = arith.constant 0 : i32
    %75 = vector.broadcast %c0_i32_26 : i32 to vector<16x1xi32>
    %76 = arith.cmpi sge, %74, %75 : vector<16x1xi32>
    %c1_i32_27 = arith.constant 1 : i32
    %77 = vector.broadcast %c1_i32_27 : i32 to vector<16x1xi32>
    %78 = arith.addi %17, %77 : vector<16x1xi32>
    %c16_i32_28 = arith.constant 16 : i32
    %79 = vector.broadcast %c16_i32_28 : i32 to vector<16x1xi32>
    %80 = arith.cmpi slt, %78, %79 : vector<16x1xi32>
    %81 = arith.andi %76, %80 : vector<16x1xi1>
    %82 = arith.extui %81 : vector<16x1xi1> to vector<16x1xi32>
    %83 = arith.sitofp %82 : vector<16x1xi32> to vector<16x1xf32>
    %84 = vector.broadcast %83 : vector<16x1xf32> to vector<16x32xf32>
    %85 = arith.mulf %72, %84 : vector<16x32xf32>
    %86 = tpu.concatenate %71, %57, %85 in 1 : vector<16x32xf32>, vector<16x32xf32>, vector<16x32xf32> -> vector<16x96xf32>
    %87 = arith.truncf %86 : vector<16x96xf32> to vector<16x96xbf16>
    %c0_29 = arith.constant 0 : index
    %c0_30 = arith.constant 0 : index
    %88 = vector.load %arg5[%c0_29, %c0_30] : memref<96x32xbf16, #tpu.memory_space<vmem>>, vector<96x32xbf16>
    %cst_31 = arith.constant dense<0.000000e+00> : vector<16x32xf32>
    %89 = tpu.matmul %87, %88, %cst_31 {dimension_numbers = #tpu.dot_dimension_numbers<[1], [0], [0], [1], [0, 0, 1, 1], [], []>} : vector<16x96xbf16>, vector<96x32xbf16>, vector<16x32xf32> -> vector<16x32xf32>
    %90 = arith.addf %89, %0 : vector<16x32xf32>
    %91 = arith.truncf %90 : vector<16x32xf32> to vector<16x32xbf16>
    %c0_32 = arith.constant 0 : index
    %c0_33 = arith.constant 0 : index
    %92 = vector.load %arg6[%c0_32, %c0_33] : memref<16x32xbf16, #tpu.memory_space<vmem>>, vector<16x32xbf16>
    tpu.vector_store %arg6[%c0_32, %c0_33], %91 {strides = array<i32>} : memref<16x32xbf16, #tpu.memory_space<vmem>>, vector<16x32xbf16>,
    %cst_34 = arith.constant dense<0.000000e+00> : vector<32xf32>
    %93 = vector.multi_reduction <add>, %90, %cst_34 [0] : vector<16x32xf32> to vector<32xf32>
    %94 = vector.shape_cast %93 : vector<32xf32> to vector<1x32xf32>
    %95 = vector.shape_cast %94 : vector<1x32xf32> to vector<1x1x32xf32>
    %c0_35 = arith.constant 0 : index
    %c0_36 = arith.constant 0 : index
    %c0_37 = arith.constant 0 : index
    %96 = vector.load %arg7[%c0_35, %c0_36, %c0_37] : memref<1x1x32xf32, #tpu.memory_space<vmem>>, vector<1x1x32xf32>
    tpu.vector_store %arg7[%c0_35, %c0_36, %c0_37], %95 {strides = array<i32>} : memref<1x1x32xf32, #tpu.memory_space<vmem>>, vector<1x1x32xf32>,
    %97 = arith.mulf %90, %90 : vector<16x32xf32>
    %cst_38 = arith.constant dense<0.000000e+00> : vector<32xf32>
    %98 = vector.multi_reduction <add>, %97, %cst_38 [0] : vector<16x32xf32> to vector<32xf32>
    %99 = vector.shape_cast %98 : vector<32xf32> to vector<1x32xf32>
    %100 = vector.shape_cast %99 : vector<1x32xf32> to vector<1x1x32xf32>
    %c0_39 = arith.constant 0 : index
    %c0_40 = arith.constant 0 : index
    %c0_41 = arith.constant 0 : index
    %101 = vector.load %arg8[%c0_39, %c0_40, %c0_41] : memref<1x1x32xf32, #tpu.memory_space<vmem>>, vector<1x1x32xf32>
    tpu.vector_store %arg8[%c0_39, %c0_40, %c0_41], %100 {strides = array<i32>} : memref<1x1x32xf32, #tpu.memory_space<vmem>>, vector<1x1x32xf32>,
    return
  }
  func.func @transform_0(%arg0: i32) -> (i32, i32) {
    %c0_i32 = arith.constant 0 : i32
    %c0_i32_0 = arith.constant 0 : i32
    return %arg0, %c0_i32 : i32, i32
  }
  func.func @transform_1(%arg0: i32) -> (i32, i32) {
    %c0_i32 = arith.constant 0 : i32
    %c0_i32_0 = arith.constant 0 : i32
    %c0_i32_1 = arith.constant 0 : i32
    return %c0_i32, %c0_i32_0 : i32, i32
  }
  func.func @transform_2(%arg0: i32) -> (i32, i32) {
    %c0_i32 = arith.constant 0 : i32
    %c0_i32_0 = arith.constant 0 : i32
    %c0_i32_1 = arith.constant 0 : i32
    return %c0_i32, %c0_i32_0 : i32, i32
  }
  func.func @transform_3(%arg0: i32) -> (i32, i32) {
    %c0_i32 = arith.constant 0 : i32
    %c0_i32_0 = arith.constant 0 : i32
    %c0_i32_1 = arith.constant 0 : i32
    return %c0_i32, %c0_i32_0 : i32, i32
  }
  func.func @transform_4(%arg0: i32) -> (i32, i32) {
    %c0_i32 = arith.constant 0 : i32
    %c0_i32_0 = arith.constant 0 : i32
    %c0_i32_1 = arith.constant 0 : i32
    return %c0_i32, %c0_i32_0 : i32, i32
  }
  func.func @transform_5(%arg0: i32) -> (i32, i32) {
    %c0_i32 = arith.constant 0 : i32
    %c0_i32_0 = arith.constant 0 : i32
    return %arg0, %c0_i32 : i32, i32
  }
  func.func @transform_6(%arg0: i32) -> (i32, i32, i32) {
    %c0_i32 = arith.constant 0 : i32
    %c0_i32_0 = arith.constant 0 : i32
    %c0_i32_1 = arith.constant 0 : i32
    return %arg0, %c0_i32, %c0_i32_0 : i32, i32, i32
  }
  func.func @transform_7(%arg0: i32) -> (i32, i32, i32) {
    %c0_i32 = arith.constant 0 : i32
    %c0_i32_0 = arith.constant 0 : i32
    %c0_i32_1 = arith.constant 0 : i32
    return %arg0, %c0_i32, %c0_i32_0 : i32, i32, i32
  }
}

</mosaic_0001>

<bundles_post_ra>
// kernel: _lambda_.2
= control target key start
LH: loop header
LB: loop body
LE: loop exit
PB: predicated region body
PF: predicated region fallthrough
CT: control target
= control target key end

     0   :  { %s558_s12 = smov 0   ;;  %s611_s0 = inlined_call_operand.vmem [shape: f32[32,32], index: 0, kind: input, shape index: {}]   ;;  %s612_s1 = inlined_call_operand.vmem [shape: bf16[96,32], index: 1, kind: input, shape index: {}]   ;;  %s613_s2 = inlined_call_operand.vmem [shape: f32[2,1,32], index: 2, kind: output, shape index: {0}]   ;;  %s614_s3 = inlined_call_operand.vmem [shape: f32[2,1,32], index: 3, kind: output, shape index: {1}]  }
   0x1 LB: > { %s564_s13 = sadd.s32 4294967295, %s532_s12   ;;  %p461_p0 = scmp.ge.s32.totalorder %s532_s12, 1  ;;  %s532_s12 = sphi %s558_s12, %s14_s12  }
   0x2   : > { %p141_p1 = scmp.lt.s32.totalorder %s532_s12, 3 }
   0x4   : > { %p142_p2 = pnand %p461_p0, %p141_p1 }
   0x5   : > { %s462_s14 = sshll.u32 (!%p142_p2), %s564_s13, 1  ;;  %v181_v0 = vlaneseq (!%p142_p2)  ;;  %v520_v1 = vld [vmem:[%s612_s1] sm:$0xff] (!%p142_p2)   ;;  %v534_v2 = vmov (!%p142_p2), 0.0   ;;  %v521_v4 = vld [vmem:[%s612_s1 + $0x8] sm:$0xff] (!%p142_p2)   ;;  %v522_v6 = vld [vmem:[%s612_s1 + $0x10] sm:$0xff] (!%p142_p2)   ;;  %vm535_vm2 = vmmov (!%p142_p2), 0  }
   0x6   : > { %145 = sbr.rel (%p142_p2) target bundleno = 377 (0x179), region = 28  ;;  %p167_p3 = scmp.lt.s32.totalorder (!%p142_p2), %s462_s14, 3  ;;  %482 = vmatprep.subr.bf16.mxu0 (!%p142_p2), %v534_v2  ;;  %494 = vmatprep.mubr.msk.bf16.mxu0 (!%p142_p2), %vm535_vm2, %v534_v2  ;;  %v523_v19 = vld [vmem:[%s612_s1 + $0x18] sm:$0xff] (!%p142_p2)   ;;  %v524_v27 = vld [vmem:[%s612_s1 + $0x20] sm:$0xff] (!%p142_p2)   ;;  %v525_v29 = vld [vmem:[%s612_s1 + $0x28] sm:$0xff] (!%p142_p2)   ;;  %vm262_vm5 = vcmask (!%p142_p2), 261120  }
   0x7   : > { %v182_v3 = vshrl.u32 (!%p142_p2), %v181_v0, 7  ;;  %483 = vmatpush3.bf16.msra.mxu0 (!%p142_p2), %v520_v1  ;;  %s536_s25 = smov (!%p142_p2), 32   ;;  %s537_s30 = smov (!%p142_p2), 64   ;;  %vm265_vm6 = vcmask (!%p142_p2), 523264   ;;  %vm317_vm7 = vcmask (!%p142_p2), 785408   ;;  %vm371_vm8 = vcmask (!%p142_p2), 253952  }
   0x8   : > { %484 = vmatprep.subr.bf16.mxu0 (!%p142_p2), %v534_v2  ;;  %p172_p4 = scmp.lt.s32.totalorder (!%p142_p2), %s564_s13, 1 }
   0x9   : > { %v183_v5 = vadd.s32 (!%p142_p2), 8, %v182_v3  ;;  %vm210_vm0 = vcmp.lt.s32.totalorder (!%p142_p2), %v182_v3, 1  ;;  %v188_v7 = vand.u32 (!%p142_p2), 15, %v182_v3  ;;  %vm229_vm1 = vcmp.lt.s32.totalorder (!%p142_p2), %v182_v3, 7 }
   0xb   : > { %v195_v8 = vand.u32 (!%p142_p2), 15, %v183_v5  ;;  %485 = vmatpush3.bf16.msra.mxu0 (!%p142_p2), %v521_v4  ;;  %v213_v11 = vadd.s32 (!%p142_p2), 4294967295, %v188_v7 }
   0xc   : > { %486 = vmatprep.subr.bf16.mxu0 (!%p142_p2), %v534_v2 }
   0xd   : > { %s616_s14 = smov (!%p167_p3, %s462_s14), 3  ;;  %v233_v17 = vadd.s32 1, %v195_v8  ;;  %vm215_vm3 = vcmp.ge.s32.totalorder %v213_v11, 0  ;;  %s618_s13 = smov (!%p172_p4, %s564_s13), 1 }
   0xe   : > { %s463_s19 = sshll.u32 %s616_s14, 3  ;;  %v464_v20 = vsel %vm215_vm3, 1.0, %v534_v2  ;;  %s174_s8 = scalar_lea.vmem %s613_s2, %s618_s13 }
   0xf   : > { %s170_s24 = scalar_lea.vmem %s611_s0, %s463_s19  ;;  %487 = vmatpush3.bf16.msra.mxu0 %v522_v6  ;;  %vm237_vm4 = vcmp.lt.s32.totalorder %v233_v17, 16  ;;  %s177_s11 = scalar_lea.vmem %s614_s3, %s618_s13 }
  0x10   : > { %v179_v9 = vld [vmem:[%s170_s24] sm:$0xff]  ;;  %v180_v10 = vld [vmem:[%s170_s24 + $0x8] sm:$0xff]  ;;  %488 = vmatprep.subr.bf16.mxu0 %v534_v2  ;;  %v465_v25 = vsel %vm237_vm4, 1.0, %v534_v2 }
  0x11   : > { %v209_v12 = vrot.slane %v180_v10, 7  ;;  %v228_v13 = vrot.slane %v180_v10, 1  ;;  %v510_v14 = vpack.i.bf16 %v180_v10, %v179_v9  ;;  %v208_v15 = vrot.slane %v179_v9, 7 }
  0x12   : > { %v227_v16 = vrot.slane %v179_v9, 1 }
  0x13   : > { %511 = vrot.lane.b32.xlu0 %v510_v14, %s536_s25  ;;  %v212_v18 = vsel %vm210_vm0, %v209_v12, %v208_v15  ;;  %v211_v21 = vsel %vm210_vm0, %v208_v15, %v209_v12  ;;  %489 = vmatpush3.bf16.msra.mxu0 %v523_v19 }
  0x14   : > { %v231_v22 = vsel %vm229_vm1, %v228_v13, %v227_v16  ;;  %v225_v23 = vmul.f32 %v464_v20, %v212_v18  ;;  %v230_v24 = vsel %vm229_vm1, %v227_v16, %v228_v13  ;;  %490 = vmatprep.subr.bf16.mxu0 %v534_v2 }
  0x15   : > { %v245_v26 = vmul.f32 %v465_v25, %v231_v22 }
  0x17   : > { %v515_v28 = vpack.i.bf16 %v245_v26, %v230_v24  ;;  %491 = vmatpush3.bf16.msra.mxu0 %v524_v27 }
  0x18   : > { %492 = vmatprep.subr.bf16.mxu0 %v534_v2 }
  0x19   : > { %516 = vrot.lane.b32.xlu0 %v515_v28, %s537_s30 }
  0x1b   : > { %493 = vmatpush3.bf16.msra.mxu0 %v525_v29 }
  0x85   : > { %v512_v30 = vpop.permute.xlu0 %511 }
  0x86   : > { %v514_v31 = vunpack.i.h.bf16 %v512_v30  ;;  %v513_v32 = vunpack.i.l.bf16 %v512_v30 }
  0x88   : > { %v263_v36 = vsel %vm262_vm5, %v225_v23, %v513_v32  ;;  %v264_v37 = vsel %vm262_vm5, %v211_v21, %v514_v31 }
  0x8b   : > { %v517_v33 = vpop.permute.xlu0 %516 }
  0x8c   : > { %v519_v34 = vunpack.i.h.bf16 %v517_v33  ;;  %v518_v35 = vunpack.i.l.bf16 %v517_v33 }
  0x8e   : > { %v266_v38 = vsel %vm265_vm6, %v263_v36, %v518_v35  ;;  %v267_v39 = vsel %vm265_vm6, %v264_v37, %v519_v34 }
  0x8f   : > { %v268_v40 = vpack.c.bf16 %v267_v39, %v266_v38 }
  0x91   : > { %495 = vmatmul.mubr.msk.bf16.vlgmr.msra.gmra.mrb[0].mxu0 %vm317_vm7, %v268_v40 }
 0x164   : > { %v355_v41 = vpop.f32.mrb[0].mxu0 }
 0x165   : > { %v373_v42 = vmul.f32 %v355_v41, %v355_v41  ;;  %v496_v43 = vpop.f32.mrb[1].mxu0  ;;  %v362_v45 = vsel %vm262_vm5, %v355_v41, 0.0 }
 0x166   : > { %v358_v44 = vpop.f32.mrb[2].mxu0 }
 0x167   : > { %v363_v46 = vsel %vm262_vm5, %v358_v44, 0.0  ;;  %v374_v47 = vmul.f32 %v358_v44, %v358_v44  ;;  %v497_v48 = vpop.f32.mrb[3].mxu0  ;;  %v375_v50 = vsel %vm262_vm5, %v373_v42, 0.0 }
 0x168   : > { %v364_v49 = vadd.f32 %v363_v46, %v362_v45 }
 0x169   : > { %v376_v51 = vsel %vm262_vm5, %v374_v47, 0.0 }
 0x16a   : > { %v365_v52 = vrot.slane %v364_v49, 4  ;;  %v377_v53 = vadd.f32 %v376_v51, %v375_v50 }
 0x16c   : > { %v366_v54 = vadd.f32 %v365_v52, %v364_v49  ;;  %v378_v55 = vrot.slane %v377_v53, 4 }
 0x16e   : > { %v367_v56 = vrot.slane %v366_v54, 2  ;;  %v379_v57 = vadd.f32 %v378_v55, %v377_v53 }
 0x170   : > { %v368_v58 = vadd.f32 %v367_v56, %v366_v54  ;;  %v380_v59 = vrot.slane %v379_v57, 2 }
 0x172   : > { %v369_v60 = vrot.slane %v368_v58, 1  ;;  %v381_v61 = vadd.f32 %v380_v59, %v379_v57 }
 0x174   : > { %v370_v62 = vadd.f32 %v369_v60, %v368_v58  ;;  %v382_v63 = vrot.slane %v381_v61, 1 }
 0x176   : > { %372 = vst.msk [vmem:[%s174_s8] sm:$0x1] %vm371_vm8, %v370_v62  ;;  %v383_v0 = vadd.f32 %v382_v63, %v381_v61 }
 0x178   : > { %384 = vst.msk [vmem:[%s177_s11] sm:$0x1] %vm371_vm8, %v383_v0 }
 0x179 PF: > { %s14_s12 = sadd.s32 1, %s532_s12  }
 0x17a   : > { %p11_p5 = scmp.ge.s32.totalorder %s14_s12, 4  }
 0x17c   :  { %13 = sbr.rel (!%p11_p5) target bundleno = 1 (0x1), region = 70 }

// kernel: _lambda_.3
= control target key start
LH: loop header
LB: loop body
LE: loop exit
PB: predicated region body
PF: predicated region fallthrough
CT: control target
= control target key end

     0   :  { %s943_s24 = smov 0   ;;  %s1093_s0 = inlined_call_operand.vmem [shape: f32[32,32], index: 0, kind: input, shape index: {}]   ;;  %s1094_s1 = inlined_call_operand.vmem [shape: bf16[96,32], index: 1, kind: input, shape index: {}]   ;;  %s1095_s2 = inlined_call_operand.vmem [shape: f32[1,32], index: 2, kind: input, shape index: {}]   ;;  %s1096_s3 = inlined_call_operand.vmem [shape: f32[1,32], index: 3, kind: input, shape index: {}]   ;;  %s1097_s4 = inlined_call_operand.vmem [shape: bf16[96,32], index: 4, kind: input, shape index: {}]   ;;  %s1098_s5 = inlined_call_operand.vmem [shape: bf16[32,32], index: 5, kind: output, shape index: {0}]   ;;  %s1099_s6 = inlined_call_operand.vmem [shape: f32[2,1,32], index: 6, kind: output, shape index: {1}]   ;;  %s1100_s7 = inlined_call_operand.vmem [shape: f32[2,1,32], index: 7, kind: output, shape index: {2}]  }
   0x1 LB: > { %s949_s25 = sadd.s32 4294967295, %s897_s24   ;;  %p772_p0 = scmp.ge.s32.totalorder %s897_s24, 1  ;;  %s897_s24 = sphi %s943_s24, %s18_s24  }
   0x2   : > { %p243_p1 = scmp.lt.s32.totalorder %s897_s24, 3 }
   0x4   : > { %p244_p2 = pnand %p772_p0, %p243_p1 }
   0x5   : > { %s773_s26 = sshll.u32 (!%p244_p2), %s949_s25, 1  ;;  %v302_v0 = vlaneseq (!%p244_p2)  ;;  %v879_v1 = vld [vmem:[%s1094_s1] sm:$0xff] (!%p244_p2)   ;;  %v899_v2 = vmov (!%p244_p2), 0.0   ;;  %v880_v4 = vld [vmem:[%s1094_s1 + $0x8] sm:$0xff] (!%p244_p2)   ;;  %v881_v7 = vld [vmem:[%s1094_s1 + $0x10] sm:$0xff] (!%p244_p2)   ;;  %vm900_vm1 = vmmov (!%p244_p2), 0  }
   0x6   : > { %247 = sbr.rel (%p244_p2) target bundleno = 725 (0x2d5), region = 40  ;;  %p282_p3 = scmp.lt.s32.totalorder (!%p244_p2), %s773_s26, 3  ;;  %815 = vmatprep.subr.bf16.mxu0 (!%p244_p2), %v899_v2  ;;  %831 = vmatprep.subr.bf16.mxu1 (!%p244_p2), %v899_v2  ;;  %v882_v14 = vld [vmem:[%s1094_s1 + $0x18] sm:$0xff] (!%p244_p2)   ;;  %v883_v19 = vld [vmem:[%s1094_s1 + $0x20] sm:$0xff] (!%p244_p2)   ;;  %v884_v21 = vld [vmem:[%s1094_s1 + $0x28] sm:$0xff] (!%p244_p2)   ;;  %vm383_vm5 = vcmask (!%p244_p2), 261120  }
   0x7   : > { %v959_v3 = vshrl.u32 (!%p244_p2), %v302_v0, 7  ;;  %816 = vmatpush3.bf16.msra.mxu0 (!%p244_p2), %v879_v1  ;;  %827 = vmatprep.mubr.msk.bf16.mxu0 (!%p244_p2), %vm900_vm1, %v899_v2  ;;  %s901_s14 = smov (!%p244_p2), 32   ;;  %s902_s19 = smov (!%p244_p2), 64   ;;  %vm386_vm6 = vcmask (!%p244_p2), 523264   ;;  %vm438_vm7 = vcmask (!%p244_p2), 785408   ;;  %v885_v41 = vld [vmem:[%s1097_s4] sm:$0xff] (!%p244_p2)  }
   0x8   : > { %817 = vmatprep.subr.bf16.mxu0 (!%p244_p2), %v899_v2  ;;  %843 = vmatprep.mubr.msk.bf16.mxu1 (!%p244_p2), %vm900_vm1, %v899_v2  ;;  %v886_v42 = vld [vmem:[%s1097_s4 + $0x8] sm:$0xff] (!%p244_p2)   ;;  %v887_v43 = vld [vmem:[%s1097_s4 + $0x10] sm:$0xff] (!%p244_p2)   ;;  %v888_v44 = vld [vmem:[%s1097_s4 + $0x18] sm:$0xff] (!%p244_p2)   ;;  %vm636_vm8 = vcmask (!%p244_p2), 257024   ;;  %p293_p4 = scmp.lt.s32.totalorder (!%p244_p2), %s949_s25, 1  ;;  %vm648_vm9 = vcmask (!%p244_p2), 253952  }
   0x9   : > { %v304_v5 = vadd.s32 (!%p244_p2), 8, %v959_v3  ;;  %vm350_vm0 = vcmp.lt.s32.totalorder (!%p244_p2), %v959_v3, 7  ;;  %v309_v22 = vand.u32 (!%p244_p2), 15, %v959_v3  ;;  %vm331_vm3 = vcmp.lt.s32.totalorder (!%p244_p2), %v959_v3, 1  ;;  %832 = vmatpush3.bf16.msra.mxu1 (!%p244_p2), %v885_v41  ;;  %v786_v45 = vld [vmem:[%s1095_s2] ss:$0 sm:$0xff] (!%p244_p2) }
   0xa   : > { %833 = vmatprep.subr.bf16.mxu1 (!%p244_p2), %v899_v2  ;;  %v889_v46 = vld [vmem:[%s1097_s4 + $0x20] sm:$0xff] (!%p244_p2)   ;;  %v890_v55 = vld [vmem:[%s1097_s4 + $0x28] sm:$0xff] (!%p244_p2)  }
   0xb   : > { %v316_v6 = vand.u32 (!%p244_p2), 15, %v304_v5  ;;  %818 = vmatpush3.bf16.msra.mxu0 (!%p244_p2), %v880_v4  ;;  %v334_v23 = vadd.s32 (!%p244_p2), 4294967295, %v309_v22  ;;  %v787_v48 = vld [vmem:[%s1096_s3] ss:$0 sm:$0xff] (!%p244_p2) }
   0xc   : > { %819 = vmatprep.subr.bf16.mxu0 (!%p244_p2), %v899_v2 }
   0xd   : > { %s1102_s26 = smov (!%p282_p3, %s773_s26), 3  ;;  %v354_v13 = vadd.s32 1, %v316_v6  ;;  %vm336_vm4 = vcmp.ge.s32.totalorder %v334_v23, 0  ;;  %834 = vmatpush3.bf16.msra.mxu1 %v886_v42  ;;  %s1104_s25 = smov (!%p293_p4, %s949_s25), 1 }
   0xe   : > { %s774_s8 = sshll.u32 %s1102_s26, 3  ;;  %v1014_v27 = vsel %vm336_vm4, 1.0, %v899_v2  ;;  %835 = vmatprep.subr.bf16.mxu1 %v899_v2  ;;  %s295_s23 = scalar_lea.vmem %s1099_s6, %s1104_s25 }
   0xf   : > { %s285_s11 = scalar_lea.vmem %s1093_s0, %s774_s8  ;;  %820 = vmatpush3.bf16.msra.mxu0 %v881_v7  ;;  %vm358_vm2 = vcmp.lt.s32.totalorder %v354_v13, 16  ;;  %s298_s29 = scalar_lea.vmem %s1100_s7, %s1104_s25 }
  0x10   : > { %v975_v8 = vld [vmem:[%s285_s11] sm:$0xff]  ;;  %v977_v9 = vld [vmem:[%s285_s11 + $0x8] sm:$0xff]  ;;  %821 = vmatprep.subr.bf16.mxu0 %v899_v2  ;;  %v997_v17 = vsel %vm358_vm2, 1.0, %v899_v2 }
  0x11   : > { %v859_v10 = vpack.i.bf16 %v977_v9, %v975_v8  ;;  %v348_v11 = vrot.slane %v975_v8, 1  ;;  %v349_v12 = vrot.slane %v977_v9, 1  ;;  %v330_v24 = vrot.slane %v977_v9, 7  ;;  %836 = vmatpush3.bf16.msra.mxu1 %v887_v43 }
  0x12   : > { %v329_v25 = vrot.slane %v975_v8, 7  ;;  %837 = vmatprep.subr.bf16.mxu1 %v899_v2 }
  0x13   : > { %860 = vrot.lane.b32.xlu0 %v859_v10, %s901_s14  ;;  %v352_v15 = vsel %vm350_vm0, %v349_v12, %v348_v11  ;;  %v351_v16 = vsel %vm350_vm0, %v348_v11, %v349_v12  ;;  %822 = vmatpush3.bf16.msra.mxu0 %v882_v14 }
  0x14   : > { %v366_v18 = vmul.f32 %v997_v17, %v352_v15  ;;  %823 = vmatprep.subr.bf16.mxu0 %v899_v2  ;;  %v333_v28 = vsel %vm331_vm3, %v330_v24, %v329_v25  ;;  %v332_v32 = vsel %vm331_vm3, %v329_v25, %v330_v24 }
  0x15   : > { %v346_v31 = vmul.f32 %v1014_v27, %v333_v28  ;;  %838 = vmatpush3.bf16.msra.mxu1 %v888_v44 }
  0x16   : > { %v864_v20 = vpack.i.bf16 %v366_v18, %v351_v16  ;;  %839 = vmatprep.subr.bf16.mxu1 %v899_v2 }
  0x17   : > { %824 = vmatpush3.bf16.msra.mxu0 %v883_v19 }
  0x18   : > { %865 = vrot.lane.b32.xlu0 %v864_v20, %s902_s19  ;;  %825 = vmatprep.subr.bf16.mxu0 %v899_v2 }
  0x19   : > { %840 = vmatpush3.bf16.msra.mxu1 %v889_v46 }
  0x1a   : > { %841 = vmatprep.subr.bf16.mxu1 %v899_v2 }
  0x1b   : > { %826 = vmatpush3.bf16.msra.mxu0 %v884_v21 }
  0x1d   : > { %842 = vmatpush3.bf16.msra.mxu1 %v890_v55 }
  0x85   : > { %v861_v26 = vpop.permute.xlu0 %860 }
  0x86   : > { %v863_v29 = vunpack.i.h.bf16 %v861_v26  ;;  %v862_v30 = vunpack.i.l.bf16 %v861_v26 }
  0x88   : > { %v384_v36 = vsel %vm383_vm5, %v346_v31, %v862_v30  ;;  %v385_v37 = vsel %vm383_vm5, %v332_v32, %v863_v29 }
  0x8a   : > { %v866_v33 = vpop.permute.xlu0 %865 }
  0x8b   : > { %v868_v34 = vunpack.i.h.bf16 %v866_v33  ;;  %v867_v35 = vunpack.i.l.bf16 %v866_v33 }
  0x8d   : > { %v387_v38 = vsel %vm386_vm6, %v384_v36, %v867_v35  ;;  %v388_v39 = vsel %vm386_vm6, %v385_v37, %v868_v34 }
  0x8e   : > { %v389_v40 = vpack.c.bf16 %v388_v39, %v387_v38 }
  0x90   : > { %828 = vmatmul.mubr.msk.bf16.vlgmr.msra.gmra.mrb[0].mxu0 %vm438_vm7, %v389_v40 }
 0x163   : > { %v476_v47 = vpop.f32.mrb[0].mxu0 }
 0x164   : > { %v490_v49 = vmul.f32 %v786_v45, %v476_v47  ;;  %v829_v50 = vpop.f32.mrb[1].mxu0 }
 0x165   : > { %v479_v51 = vpop.f32.mrb[2].mxu0 }
 0x166   : > { %v499_v52 = vadd.f32 %v787_v48, %v490_v49  ;;  %v491_v53 = vmul.f32 %v786_v45, %v479_v51  ;;  %v830_v54 = vpop.f32.mrb[3].mxu0 }
 0x168   : > { %v501_v56 = vmax.f32 %v499_v52, 0.0  ;;  %v500_v57 = vadd.f32 %v787_v48, %v491_v53 }
 0x16a   : > { %v502_v58 = vmax.f32 %v500_v57, 0.0  ;;  %v503_v59 = vrot.slane %v501_v56, 7  ;;  %v509_v60 = vrot.slane %v501_v56, 1 }
 0x16c   : > { %v504_v61 = vrot.slane %v502_v58, 7  ;;  %v510_v62 = vrot.slane %v502_v58, 1  ;;  %v869_v63 = vpack.i.bf16 %v502_v58, %v501_v56 }
 0x16e   : > { %870 = vrot.lane.b32.xlu1 %v869_v63, %s901_s14  ;;  %v511_v0 = vsel %vm350_vm0, %v509_v60, %v510_v62  ;;  %v512_v1 = vsel %vm350_vm0, %v510_v62, %v509_v60  ;;  %v505_v2 = vsel %vm331_vm3, %v503_v59, %v504_v61  ;;  %v506_v4 = vsel %vm331_vm3, %v504_v61, %v503_v59  ;;  %s776_s14 = sshll.u32 %s1102_s26, 2 }
 0x16f   : > { %v514_v5 = vmul.f32 %v997_v17, %v512_v1  ;;  %v507_v12 = vmul.f32 %v1014_v27, %v506_v4  ;;  %s291_s21 = scalar_lea.vmem %s1098_s5, %s776_s14 }
 0x171   : > { %v874_v6 = vpack.i.bf16 %v514_v5, %v511_v0 }
 0x173   : > { %875 = vrot.lane.b32.xlu1 %v874_v6, %s902_s19 }
 0x1e0   : > { %v871_v7 = vpop.permute.xlu1 %870 }
 0x1e1   : > { %v873_v10 = vunpack.i.h.bf16 %v871_v7  ;;  %v872_v11 = vunpack.i.l.bf16 %v871_v7 }
 0x1e3   : > { %v531_v16 = vsel %vm383_vm5, %v507_v12, %v872_v11  ;;  %v532_v18 = vsel %vm383_vm5, %v505_v2, %v873_v10 }
 0x1e5   : > { %v876_v13 = vpop.permute.xlu1 %875 }
 0x1e6   : > { %v878_v14 = vunpack.i.h.bf16 %v876_v13  ;;  %v877_v15 = vunpack.i.l.bf16 %v876_v13 }
 0x1e8   : > { %v533_v3 = vsel %vm386_vm6, %v531_v16, %v877_v15  ;;  %v534_v17 = vsel %vm386_vm6, %v532_v18, %v878_v14 }
 0x1e9   : > { %v535_v19 = vpack.c.bf16 %v534_v17, %v533_v3 }
 0x1eb   : > { %844 = vmatmul.mubr.msk.bf16.vlgmr.msra.gmra.mrb[0].mxu1 %vm438_vm7, %v535_v19 }
 0x2be   : > { %v621_v20 = vpop.f32.mrb[0].mxu1 }
 0x2bf   : > { %v622_v21 = vadd.f32 %v621_v20, %v975_v8  ;;  %v845_v22 = vpop.f32.mrb[1].mxu1 }
 0x2c0   : > { %v624_v23 = vpop.f32.mrb[2].mxu1 }
 0x2c1   : > { %v799_v24 = vpack.c.bf16 %v622_v21, %v622_v21  ;;  %v650_v25 = vmul.f32 %v622_v21, %v622_v21  ;;  %v625_v26 = vadd.f32 %v624_v23, %v977_v9  ;;  %v846_v27 = vpop.f32.mrb[3].mxu1  ;;  %v639_v28 = vsel %vm383_vm5, %v622_v21, 0.0 }
 0x2c3   : > { %637 = vst.msk [vmem:[%s291_s21] sm:$0xf] %vm636_vm8, %v799_v24  ;;  %v800_v29 = vpack.c.bf16 %v625_v26, %v625_v26  ;;  %v640_v8 = vsel %vm383_vm5, %v625_v26, 0.0  ;;  %v651_v30 = vmul.f32 %v625_v26, %v625_v26  ;;  %v652_v32 = vsel %vm383_vm5, %v650_v25, 0.0 }
 0x2c4   : > { %v641_v31 = vadd.f32 %v640_v8, %v639_v28 }
 0x2c5   : > { %638 = vst.msk [vmem:[%s291_s21 + $0x4] sm:$0xf] %vm636_vm8, %v800_v29  ;;  %v653_v33 = vsel %vm383_vm5, %v651_v30, 0.0 }
 0x2c6   : > { %v642_v34 = vrot.slane %v641_v31, 4  ;;  %v654_v35 = vadd.f32 %v653_v33, %v652_v32 }
 0x2c8   : > { %v643_v36 = vadd.f32 %v642_v34, %v641_v31  ;;  %v655_v9 = vrot.slane %v654_v35, 4 }
 0x2ca   : > { %v644_v37 = vrot.slane %v643_v36, 2  ;;  %v656_v38 = vadd.f32 %v655_v9, %v654_v35 }
 0x2cc   : > { %v645_v39 = vadd.f32 %v644_v37, %v643_v36  ;;  %v657_v40 = vrot.slane %v656_v38, 2 }
 0x2ce   : > { %v646_v41 = vrot.slane %v645_v39, 1  ;;  %v658_v42 = vadd.f32 %v657_v40, %v656_v38 }
 0x2d0   : > { %v647_v43 = vadd.f32 %v646_v41, %v645_v39  ;;  %v659_v44 = vrot.slane %v658_v42, 1 }
 0x2d2   : > { %649 = vst.msk [vmem:[%s295_s23] sm:$0x1] %vm648_vm9, %v647_v43  ;;  %v660_v45 = vadd.f32 %v659_v44, %v658_v42 }
 0x2d4   : > { %661 = vst.msk [vmem:[%s298_s29] sm:$0x1] %vm648_vm9, %v660_v45 }
 0x2d5 PF: > { %s18_s24 = sadd.s32 1, %s897_s24  }
 0x2d6   : > { %p15_p5 = scmp.ge.s32.totalorder %s18_s24, 4  }
 0x2d8   :  { %17 = sbr.rel (!%p15_p5) target bundleno = 1 (0x1), region = 94 }

</bundles_post_ra>
